<compile_context>
chip_gen: v5e
topology: v5e:2x2
jax: 0.10.0
libtpu: 0.0.40
codegen_flags: <defaults>
</compile_context>

<pallas_src>
import functools

import numpy as np
import jax
import jax.numpy as jnp
from jax import lax
from jax.experimental import pallas as pl
from jax.experimental.pallas import tpu as pltpu


def _vmem_limit_bytes():
    """Per-generation scoped-VMEM budget (3/4 of physical, capped at 96 MiB)."""
    try:
        cap = int(pltpu.get_tpu_info().vmem_capacity_bytes)
    except Exception:
        cap = 64 * 1024 * 1024          # conservative (v7x-sized) fallback
    return max(32 * 1024 * 1024, min((cap * 3) // 4, 96 * 1024 * 1024))


def _pick_block(L, target):
    """Largest multiple-of-8 block <= target dividing L (fallback: L itself)."""
    if L <= target:
        return L
    bs = (target // 8) * 8
    while bs >= 8:
        if L % bs == 0:
            return bs
        bs -= 8
    return L


# ---------------------------------------------------------------------------
# Stage 1: per-head projection kernels writing head-major (B, H, L, d_k).
# grid = (B, row_blocks, H); h innermost so the x row-block stays resident in
# VMEM across all heads (only the small (D, d_k) weight slice changes).
# ---------------------------------------------------------------------------
def q_proj_kernel(x_ref, wq_ref, q_ref, *, scale, use_bf16):
    x = x_ref[0]                                   # (br, D)
    wq = wq_ref[0]                                 # (D, d_k)
    if use_bf16:
        x, wq = x.astype(jnp.bfloat16), wq.astype(jnp.bfloat16)
    q_ref[0, 0] = jnp.dot(x, wq, preferred_element_type=jnp.float32) * scale


def kv_proj_kernel(x_ref, wk_ref, wv_ref, k_ref, v_ref, *, use_bf16):
    x = x_ref[0]
    wk, wv = wk_ref[0], wv_ref[0]
    if use_bf16:
        x = x.astype(jnp.bfloat16)
        wk, wv = wk.astype(jnp.bfloat16), wv.astype(jnp.bfloat16)
    k_ref[0, 0] = jnp.dot(x, wk, preferred_element_type=jnp.float32)
    v_ref[0, 0] = jnp.dot(x, wv, preferred_element_type=jnp.float32)


def qkv_proj_kernel(x_ref, wq_ref, wk_ref, wv_ref, q_ref, k_ref, v_ref, *,
                    scale, use_bf16):
    # Self-attention fast path: x read from HBM once for all three projections.
    x = x_ref[0]
    wq, wk, wv = wq_ref[0], wk_ref[0], wv_ref[0]
    if use_bf16:
        x = x.astype(jnp.bfloat16)
        wq, wk, wv = (wq.astype(jnp.bfloat16), wk.astype(jnp.bfloat16),
                      wv.astype(jnp.bfloat16))
    q_ref[0, 0] = jnp.dot(x, wq, preferred_element_type=jnp.float32) * scale
    k_ref[0, 0] = jnp.dot(x, wk, preferred_element_type=jnp.float32)
    v_ref[0, 0] = jnp.dot(x, wv, preferred_element_type=jnp.float32)


# ---------------------------------------------------------------------------
# Stage 2: attention kernel.  grid = (B, H, q_blocks) — K, V and the kv-pad
# mask block indices are constant across the innermost axis, so Pallas skips
# their re-DMA.  Outputs per-head context (and optionally raw attn weights).
# ---------------------------------------------------------------------------
def attention_kernel(q_ref, k_ref, v_ref, qmask_ref, kvmask_ref, *out_refs,
                     block_q, masked, with_attw, use_bf16):
    qi = pl.program_id(2)
    ctx_ref = out_refs[0]
    attw_ref = out_refs[1] if with_attw else None

    qh = q_ref[0, 0]          # (block_q, d_k), already scaled by d_k**-0.5
    kh = k_ref[0, 0]          # (Lk, d_k)
    vh = v_ref[0, 0]          # (Lk, d_k)
    Lk = kh.shape[0]

    # scores = qh @ kh^T  (contract d_k without an explicit transpose)
    if use_bf16:
        s = lax.dot_general(qh.astype(jnp.bfloat16), kh.astype(jnp.bfloat16),
                            (((1,), (1,)), ((), ())),
                            preferred_element_type=jnp.float32)
    else:
        s = lax.dot_general(qh, kh, (((1,), (1,)), ((), ())),
                            preferred_element_type=jnp.float32)   # (block_q, Lk)

    # One fused mask: query padding (rows) | kv padding (cols) | causal.
    q_is_pad = qmask_ref[0] != 0                                  # (block_q, 1)
    kv_is_pad = kvmask_ref[0] != 0                                # (1, Lk)
    blocked = jnp.logical_or(q_is_pad, kv_is_pad)                 # (block_q, Lk)
    if masked:
        # Causal path assumes Lq == Lk (asserted in the wrapper, like torch).
        row = lax.broadcasted_iota(jnp.int32, (block_q, Lk), 0) + qi * block_q
        col = lax.broadcasted_iota(jnp.int32, (block_q, Lk), 1)
        blocked = jnp.logical_or(blocked, col > row)
        # TODO(synk): with a KV-block grid axis, whole tiles above the diagonal
        # could be skipped via pl.when (flash-style); not needed at these sizes.
    s = jnp.where(blocked, -jnp.inf, s)

    # Softmax; fully masked rows -> NaN (torch semantics), kept in attw output.
    m = jnp.max(s, axis=-1, keepdims=True)
    e = jnp.exp(s - m)
    denom = jnp.sum(e, axis=-1, keepdims=True)
    p = e * pl.reciprocal(denom)               # exact reciprocal (EUP slot)
    if with_attw:
        attw_ref[0, 0] = p                     # raw weights (NaN on dead rows)

    # NaN -> 0 before the PV matmul, via a (block_q, 1) row flag instead of a
    # full-tile isnan compare.
    row_dead = jnp.all(blocked, axis=-1, keepdims=True)
    p_clean = jnp.where(row_dead, jnp.float32(0.0), p)
    if use_bf16:
        ctx = jnp.dot(p_clean.astype(jnp.bfloat16), vh.astype(jnp.bfloat16),
                      preferred_element_type=jnp.float32)
    else:
        ctx = jnp.dot(p_clean, vh, preferred_element_type=jnp.float32)
    ctx_ref[0, 0] = ctx                        # (block_q, d_k)


# ---------------------------------------------------------------------------
# Stage 3: output projection.  grid = (B, row_blocks, H); head axis innermost
# is the reduction; '=' on the first head, '+=' afterwards (no zero-fill).
# ---------------------------------------------------------------------------
def out_proj_kernel(ctx_ref, wo_ref, o_ref, *, use_bf16):
    h = pl.program_id(2)
    ctx = ctx_ref[0, 0]                        # (br, d_k)
    wo = wo_ref[0]                             # (d_k, D)
    if use_bf16:
        ctx, wo = ctx.astype(jnp.bfloat16), wo.astype(jnp.bfloat16)
    y = jnp.dot(ctx, wo, preferred_element_type=jnp.float32)

    @pl.when(h == 0)
    def _first():
        o_ref[0] = y

    @pl.when(h > 0)
    def _rest():
        o_ref[0] += y
    # TODO(synk): nn.Dropout is identity in eval mode; training dropout not implemented.


# ---------------------------------------------------------------------------
# Wrapper
# ---------------------------------------------------------------------------
def multi_head_attention(xq, xkv, q_pad_mask, kv_pad_mask,
                         wq_t, wk_t, wv_t, wo_t, *, n_heads, masked,
                         block_q=None, return_weights=True, use_bf16=False):
    """Returns (attention_out (B,Lq,D), attention_weights (B,H,Lq,Lk) or None).

    Weights are the nn.Linear weights pre-transposed to (D_in, D_out), so
    y = x @ W matches nn.Linear(bias=False).  `use_bf16` is opt-in (relaxes
    strict parity); `return_weights=False` skips the attw HBM writeback.
    """
    B, Lq, D = xq.shape
    Lk = xkv.shape[1]
    assert D % n_heads == 0
    H = n_heads
    d_k = D // n_heads
    scale = float(d_k) ** -0.5
    if masked:
        assert Lq == Lk, "causal (masked=True) path requires Lq == Lk"

    self_attn = xq is xkv
    xq = jnp.asarray(xq, jnp.float32)
    xkv = xq if self_attn else jnp.asarray(xkv, jnp.float32)

    # Per-head weight slices (tiny (D,D) relayouts; activations are never
    # transposed).
    wq_h = jnp.asarray(wq_t, jnp.float32).reshape(D, H, d_k).transpose(1, 0, 2)
    wk_h = jnp.asarray(wk_t, jnp.float32).reshape(D, H, d_k).transpose(1, 0, 2)
    wv_h = jnp.asarray(wv_t, jnp.float32).reshape(D, H, d_k).transpose(1, 0, 2)
    wo_h = jnp.asarray(wo_t, jnp.float32).reshape(H, d_k, D)

    qm = q_pad_mask.astype(jnp.int32).reshape(B, Lq, 1)   # masks score ROWS
    kvm = kv_pad_mask.astype(jnp.int32).reshape(B, 1, Lk)  # masks score COLUMNS

    vmem = _vmem_limit_bytes()

    def x_spec(br):
        return pl.BlockSpec((1, br, D), lambda b, r, h: (b, r, 0))

    def w_spec():
        return pl.BlockSpec((1, D, d_k), lambda b, r, h: (h, 0, 0))

    def head_out_spec(br):
        return pl.BlockSpec((1, 1, br, d_k), lambda b, r, h: (b, h, r, 0))

    # ---- stage 1: per-head projections -> (B, H, L, d_k) -------------------
    br_q = _pick_block(Lq, 512)
    br_kv = _pick_block(Lk, 512)

    if self_attn:
        q, k, v = pl.pallas_call(
            functools.partial(qkv_proj_kernel, scale=scale, use_bf16=use_bf16),
            out_shape=(jax.ShapeDtypeStruct((B, H, Lq, d_k), jnp.float32),
                       jax.ShapeDtypeStruct((B, H, Lq, d_k), jnp.float32),
                       jax.ShapeDtypeStruct((B, H, Lq, d_k), jnp.float32)),
            grid_spec=pltpu.PrefetchScalarGridSpec(
                num_scalar_prefetch=0,
                grid=(B, Lq // br_q, H),
                in_specs=[x_spec(br_q), w_spec(), w_spec(), w_spec()],
                out_specs=[head_out_spec(br_q), head_out_spec(br_q),
                           head_out_spec(br_q)]),
            compiler_params=pltpu.CompilerParams(
                dimension_semantics=("parallel", "parallel", "parallel"),
                vmem_limit_bytes=vmem),
        )(xq, wq_h, wk_h, wv_h)
    else:
        q = pl.pallas_call(
            functools.partial(q_proj_kernel, scale=scale, use_bf16=use_bf16),
            out_shape=jax.ShapeDtypeStruct((B, H, Lq, d_k), jnp.float32),
            grid_spec=pltpu.PrefetchScalarGridSpec(
                num_scalar_prefetch=0,
                grid=(B, Lq // br_q, H),
                in_specs=[x_spec(br_q), w_spec()],
                out_specs=head_out_spec(br_q)),
            compiler_params=pltpu.CompilerParams(
                dimension_semantics=("parallel", "parallel", "parallel"),
                vmem_limit_bytes=vmem),
        )(xq, wq_h)
        k, v = pl.pallas_call(
            functools.partial(kv_proj_kernel, use_bf16=use_bf16),
            out_shape=(jax.ShapeDtypeStruct((B, H, Lk, d_k), jnp.float32),
                       jax.ShapeDtypeStruct((B, H, Lk, d_k), jnp.float32)),
            grid_spec=pltpu.PrefetchScalarGridSpec(
                num_scalar_prefetch=0,
                grid=(B, Lk // br_kv, H),
                in_specs=[x_spec(br_kv), w_spec(), w_spec()],
                out_specs=[head_out_spec(br_kv), head_out_spec(br_kv)]),
            compiler_params=pltpu.CompilerParams(
                dimension_semantics=("parallel", "parallel", "parallel"),
                vmem_limit_bytes=vmem),
        )(xkv, wk_h, wv_h)

    # ---- stage 2: attention (per-head context, optional raw weights) -------
    if block_q is None:
        block_q = _pick_block(Lq, 256)
    assert Lq % block_q == 0, "block_q must divide Lq"
    n_qb = Lq // block_q
    # TODO(synk): for very long Lk (v7x 64 MiB VMEM) add a KV-block grid axis
    # with flash-style online softmax; full-Lk K/V tiles are fine at these sizes.

    attn_kern = functools.partial(attention_kernel, block_q=block_q,
                                  masked=masked, with_attw=return_weights,
                                  use_bf16=use_bf16)
    in_specs = [
        pl.BlockSpec((1, 1, block_q, d_k), lambda b, h, i: (b, h, i, 0)),  # q
        pl.BlockSpec((1, 1, Lk, d_k), lambda b, h, i: (b, h, 0, 0)),       # k (resident over i)
        pl.BlockSpec((1, 1, Lk, d_k), lambda b, h, i: (b, h, 0, 0)),       # v (resident over i)
        pl.BlockSpec((1, block_q, 1), lambda b, h, i: (b, i, 0)),          # q pad mask
        pl.BlockSpec((1, 1, Lk), lambda b, h, i: (b, 0, 0)),               # kv pad mask
    ]
    ctx_spec = pl.BlockSpec((1, 1, block_q, d_k), lambda b, h, i: (b, h, i, 0))
    ctx_shape = jax.ShapeDtypeStruct((B, H, Lq, d_k), jnp.float32)
    if return_weights:
        out_specs = [ctx_spec,
                     pl.BlockSpec((1, 1, block_q, Lk), lambda b, h, i: (b, h, i, 0))]
        out_shape = (ctx_shape, jax.ShapeDtypeStruct((B, H, Lq, Lk), jnp.float32))
    else:
        out_specs = ctx_spec
        out_shape = ctx_shape

    res = pl.pallas_call(
        attn_kern,
        out_shape=out_shape,
        grid_spec=pltpu.PrefetchScalarGridSpec(
            num_scalar_prefetch=0,
            grid=(B, H, n_qb),
            in_specs=in_specs,
            out_specs=out_specs),
        compiler_params=pltpu.CompilerParams(
            dimension_semantics=("parallel", "parallel", "parallel"),
            vmem_limit_bytes=vmem),
    )(q, k, v, qm, kvm)
    if return_weights:
        ctx, attw = res
    else:
        ctx, attw = res, None

    # ---- stage 3: output projection (head-axis reduction) ------------------
    br_o = _pick_block(Lq, 256)
    out = pl.pallas_call(
        functools.partial(out_proj_kernel, use_bf16=use_bf16),
        out_shape=jax.ShapeDtypeStruct((B, Lq, D), jnp.float32),
        grid_spec=pltpu.PrefetchScalarGridSpec(
            num_scalar_prefetch=0,
            grid=(B, Lq // br_o, H),        # head axis innermost (reduction)
            in_specs=[
                pl.BlockSpec((1, 1, br_o, d_k), lambda b, r, h: (b, h, r, 0)),
                pl.BlockSpec((1, d_k, D), lambda b, r, h: (h, 0, 0)),
            ],
            out_specs=pl.BlockSpec((1, br_o, D), lambda b, r, h: (b, r, 0))),
        compiler_params=pltpu.CompilerParams(
            dimension_semantics=("parallel", "parallel", "arbitrary"),
            vmem_limit_bytes=vmem),
    )(ctx, wo_h)
    return out, attw


# ---------------------------------------------------------------------------
# Pure-JAX reference mirroring the PyTorch forward.  (The softmax scale is
# folded into q — mathematically identical to (q @ k^T) * d_k**-0.5 — so the
# kernel and reference share the same rounding.)
# ---------------------------------------------------------------------------
def mha_reference(xq, xkv, q_pad_mask, kv_pad_mask,
                  wq_t, wk_t, wv_t, wo_t, *, n_heads, masked):
    B, Lq, D = xq.shape
    Lk = xkv.shape[1]
    d_k = D // n_heads
    split = lambda x, L: x.reshape(B, L, n_heads, d_k).transpose(0, 2, 1, 3)
    q = split((xq @ wq_t) * d_k ** (-0.5), Lq)
    k = split(xkv @ wk_t, Lk)
    v = split(xkv @ wv_t, Lk)
    s = jnp.einsum('bhid,bhjd->bhij', q, k)
    s = jnp.where(q_pad_mask[:, None, :, None], -jnp.inf, s)
    s = jnp.where(kv_pad_mask[:, None, None, :], -jnp.inf, s)
    if masked:
        causal = jnp.tril(jnp.ones((Lq, Lq))) == 0
        s = jnp.where(causal[None, None], -jnp.inf, s)
    m = jnp.max(s, -1, keepdims=True)
    e = jnp.exp(s - m)
    p = e / jnp.sum(e, -1, keepdims=True)          # NaN on fully masked rows
    p_clean = jnp.where(jnp.isnan(p), 0.0, p)
    ctx = jnp.einsum('bhij,bhjd->bhid', p_clean, v)
    ctx = ctx.transpose(0, 2, 1, 3).reshape(B, Lq, D)
    return ctx @ wo_t, p


if __name__ == "__main__":
    B, D, H = 2, 32, 4
    key = jax.random.PRNGKey(0)
    ks = jax.random.split(key, 8)

    # Deterministic "Linear(d_model, d_model, bias=False)" weights, transposed.
    lim = 1.0 / np.sqrt(D)
    wq_t = jax.random.uniform(ks[0], (D, D), jnp.float32, -lim, lim)
    wk_t = jax.random.uniform(ks[1], (D, D), jnp.float32, -lim, lim)
    wv_t = jax.random.uniform(ks[2], (D, D), jnp.float32, -lim, lim)
    wo_t = jax.random.uniform(ks[3], (D, D), jnp.float32, -lim, lim)

    # --- test 1: masked self-attention (fused QKV path), padded rows -> NaN --
    Lq = 16
    x = jax.random.normal(ks[4], (B, Lq, D), jnp.float32)
    q_pad = jnp.zeros((B, Lq), dtype=bool).at[1, 12:].set(True)
    kv_pad = q_pad

    out, attw = multi_head_attention(x, x, q_pad, kv_pad,
                                     wq_t, wk_t, wv_t, wo_t,
                                     n_heads=H, masked=True, block_q=8)
    out = jax.block_until_ready(out)
    attw = jax.block_until_ready(attw)
    ref_out, ref_attw = mha_reference(x, x, q_pad, kv_pad,
                                      wq_t, wk_t, wv_t, wo_t,
                                      n_heads=H, masked=True)
    assert np.allclose(np.asarray(out), np.asarray(ref_out), atol=1e-4, rtol=1e-4)
    assert np.allclose(np.asarray(attw), np.asarray(ref_attw),
                       atol=2e-5, rtol=2e-5, equal_nan=True)

    # --- test 2: cross-attention, no causal mask, Lq != Lk -------------------
    Lk = 24
    xq = jax.random.normal(ks[5], (B, Lq, D), jnp.float32)
    xkv = jax.random.normal(ks[6], (B, Lk, D), jnp.float32)
    q_pad2 = jnp.zeros((B, Lq), dtype=bool).at[1, 12:].set(True)
    kv_pad2 = jnp.zeros((B, Lk), dtype=bool).at[1, 20:].set(True)
    out2, attw2 = multi_head_attention(xq, xkv, q_pad2, kv_pad2,
                                       wq_t, wk_t, wv_t, wo_t,
                                       n_heads=H, masked=False)
    out2 = jax.block_until_ready(out2)
    attw2 = jax.block_until_ready(attw2)
    ref_out2, ref_attw2 = mha_reference(xq, xkv, q_pad2, kv_pad2,
                                        wq_t, wk_t, wv_t, wo_t,
                                        n_heads=H, masked=False)
    assert np.allclose(np.asarray(out2), np.asarray(ref_out2), atol=1e-4, rtol=1e-4)
    assert np.allclose(np.asarray(attw2), np.asarray(ref_attw2),
                       atol=2e-5, rtol=2e-5, equal_nan=True)

    # --- test 3: weights not requested (attw HBM writeback skipped) ----------
    out3, attw3 = multi_head_attention(x, x, q_pad, kv_pad,
                                       wq_t, wk_t, wv_t, wo_t,
                                       n_heads=H, masked=True, block_q=8,
                                       return_weights=False)
    out3 = jax.block_until_ready(out3)
    assert attw3 is None
    assert np.allclose(np.asarray(out3), np.asarray(ref_out), atol=1e-4, rtol=1e-4)

    # --- test 4: opt-in bf16 MXU path (relaxed tolerance) --------------------
    out4, _ = multi_head_attention(x, x, q_pad, kv_pad,
                                   wq_t, wk_t, wv_t, wo_t,
                                   n_heads=H, masked=True, block_q=8,
                                   return_weights=False, use_bf16=True)
    out4 = jax.block_until_ready(out4)
    assert np.allclose(np.asarray(out4), np.asarray(ref_out), atol=3e-2, rtol=3e-2)

    print("KERNEL_OK")
</pallas_src>

<mosaic_0001>
module attributes {stable_mosaic.version = 11 : i64} {
  func.func @qkv_proj_kernel(%arg0: i32, %arg1: i32, %arg2: i32, %arg3: memref<1x16x32xf32, #tpu.memory_space<vmem>>, %arg4: memref<1x32x8xf32, #tpu.memory_space<vmem>>, %arg5: memref<1x32x8xf32, #tpu.memory_space<vmem>>, %arg6: memref<1x32x8xf32, #tpu.memory_space<vmem>>, %arg7: memref<1x1x16x8xf32, #tpu.memory_space<vmem>>, %arg8: memref<1x1x16x8xf32, #tpu.memory_space<vmem>>, %arg9: memref<1x1x16x8xf32, #tpu.memory_space<vmem>>) attributes {dimension_semantics = [#tpu.dimension_semantics<parallel>, #tpu.dimension_semantics<parallel>, #tpu.dimension_semantics<parallel>], iteration_bounds = array<i64: 2, 1, 4>, scalar_prefetch = 0 : i64, scratch_operands = 0 : i64, tpu.core_type = #tpu.core_type<tc>, window_params = [{transform_indices = @transform_0, window_bounds = array<i64: 1, 16, 32>}, {transform_indices = @transform_1, window_bounds = array<i64: 1, 32, 8>}, {transform_indices = @transform_2, window_bounds = array<i64: 1, 32, 8>}, {transform_indices = @transform_3, window_bounds = array<i64: 1, 32, 8>}, {transform_indices = @transform_4, window_bounds = array<i64: 1, 1, 16, 8>}, {transform_indices = @transform_5, window_bounds = array<i64: 1, 1, 16, 8>}, {transform_indices = @transform_6, window_bounds = array<i64: 1, 1, 16, 8>}]} {
    %c0 = arith.constant 0 : index
    %c0_0 = arith.constant 0 : index
    %c0_1 = arith.constant 0 : index
    %0 = vector.load %arg3[%c0, %c0_0, %c0_1] : memref<1x16x32xf32, #tpu.memory_space<vmem>>, vector<1x16x32xf32>
    %1 = vector.shape_cast %0 : vector<1x16x32xf32> to vector<16x32xf32>
    %c0_2 = arith.constant 0 : index
    %c0_3 = arith.constant 0 : index
    %c0_4 = arith.constant 0 : index
    %2 = vector.load %arg4[%c0_2, %c0_3, %c0_4] : memref<1x32x8xf32, #tpu.memory_space<vmem>>, vector<1x32x8xf32>
    %3 = vector.shape_cast %2 : vector<1x32x8xf32> to vector<32x8xf32>
    %c0_5 = arith.constant 0 : index
    %c0_6 = arith.constant 0 : index
    %c0_7 = arith.constant 0 : index
    %4 = vector.load %arg5[%c0_5, %c0_6, %c0_7] : memref<1x32x8xf32, #tpu.memory_space<vmem>>, vector<1x32x8xf32>
    %5 = vector.shape_cast %4 : vector<1x32x8xf32> to vector<32x8xf32>
    %c0_8 = arith.constant 0 : index
    %c0_9 = arith.constant 0 : index
    %c0_10 = arith.constant 0 : index
    %6 = vector.load %arg6[%c0_8, %c0_9, %c0_10] : memref<1x32x8xf32, #tpu.memory_space<vmem>>, vector<1x32x8xf32>
    %7 = vector.shape_cast %6 : vector<1x32x8xf32> to vector<32x8xf32>
    %cst = arith.constant dense<0.000000e+00> : vector<16x8xf32>
    %8 = tpu.matmul %1, %3, %cst {dimension_numbers = #tpu.dot_dimension_numbers<[1], [0], [0], [1], [0, 0, 1, 1], [], []>} : vector<16x32xf32>, vector<32x8xf32>, vector<16x8xf32> -> vector<16x8xf32>
    %cst_11 = arith.constant 0.353553385 : f32
    %9 = vector.broadcast %cst_11 : f32 to vector<16x8xf32>
    %10 = arith.mulf %8, %9 : vector<16x8xf32>
    %c0_12 = arith.constant 0 : index
    %c0_13 = arith.constant 0 : index
    %c0_14 = arith.constant 0 : index
    %c0_15 = arith.constant 0 : index
    %11 = vector.load %arg7[%c0_12, %c0_13, %c0_14, %c0_15] : memref<1x1x16x8xf32, #tpu.memory_space<vmem>>, vector<1x1x16x8xf32>
    %12 = vector.shape_cast %11 : vector<1x1x16x8xf32> to vector<16x8xf32>
    %13 = vector.shape_cast %10 : vector<16x8xf32> to vector<1x1x16x8xf32>
    tpu.vector_store %arg7[%c0_12, %c0_13, %c0_14, %c0_15], %13 {strides = array<i32>} : memref<1x1x16x8xf32, #tpu.memory_space<vmem>>, vector<1x1x16x8xf32>,
    %cst_16 = arith.constant dense<0.000000e+00> : vector<16x8xf32>
    %14 = tpu.matmul %1, %5, %cst_16 {dimension_numbers = #tpu.dot_dimension_numbers<[1], [0], [0], [1], [0, 0, 1, 1], [], []>} : vector<16x32xf32>, vector<32x8xf32>, vector<16x8xf32> -> vector<16x8xf32>
    %c0_17 = arith.constant 0 : index
    %c0_18 = arith.constant 0 : index
    %c0_19 = arith.constant 0 : index
    %c0_20 = arith.constant 0 : index
    %15 = vector.load %arg8[%c0_17, %c0_18, %c0_19, %c0_20] : memref<1x1x16x8xf32, #tpu.memory_space<vmem>>, vector<1x1x16x8xf32>
    %16 = vector.shape_cast %15 : vector<1x1x16x8xf32> to vector<16x8xf32>
    %17 = vector.shape_cast %14 : vector<16x8xf32> to vector<1x1x16x8xf32>
    tpu.vector_store %arg8[%c0_17, %c0_18, %c0_19, %c0_20], %17 {strides = array<i32>} : memref<1x1x16x8xf32, #tpu.memory_space<vmem>>, vector<1x1x16x8xf32>,
    %cst_21 = arith.constant dense<0.000000e+00> : vector<16x8xf32>
    %18 = tpu.matmul %1, %7, %cst_21 {dimension_numbers = #tpu.dot_dimension_numbers<[1], [0], [0], [1], [0, 0, 1, 1], [], []>} : vector<16x32xf32>, vector<32x8xf32>, vector<16x8xf32> -> vector<16x8xf32>
    %c0_22 = arith.constant 0 : index
    %c0_23 = arith.constant 0 : index
    %c0_24 = arith.constant 0 : index
    %c0_25 = arith.constant 0 : index
    %19 = vector.load %arg9[%c0_22, %c0_23, %c0_24, %c0_25] : memref<1x1x16x8xf32, #tpu.memory_space<vmem>>, vector<1x1x16x8xf32>
    %20 = vector.shape_cast %19 : vector<1x1x16x8xf32> to vector<16x8xf32>
    %21 = vector.shape_cast %18 : vector<16x8xf32> to vector<1x1x16x8xf32>
    tpu.vector_store %arg9[%c0_22, %c0_23, %c0_24, %c0_25], %21 {strides = array<i32>} : memref<1x1x16x8xf32, #tpu.memory_space<vmem>>, vector<1x1x16x8xf32>,
    return
  }
  func.func @transform_0(%arg0: i32, %arg1: i32, %arg2: i32) -> (i32, i32, i32) {
    %c0_i32 = arith.constant 0 : i32
    %c0_i32_0 = arith.constant 0 : i32
    return %arg0, %arg1, %c0_i32 : i32, i32, i32
  }
  func.func @transform_1(%arg0: i32, %arg1: i32, %arg2: i32) -> (i32, i32, i32) {
    %c0_i32 = arith.constant 0 : i32
    %c0_i32_0 = arith.constant 0 : i32
    %c0_i32_1 = arith.constant 0 : i32
    return %arg2, %c0_i32, %c0_i32_0 : i32, i32, i32
  }
  func.func @transform_2(%arg0: i32, %arg1: i32, %arg2: i32) -> (i32, i32, i32) {
    %c0_i32 = arith.constant 0 : i32
    %c0_i32_0 = arith.constant 0 : i32
    %c0_i32_1 = arith.constant 0 : i32
    return %arg2, %c0_i32, %c0_i32_0 : i32, i32, i32
  }
  func.func @transform_3(%arg0: i32, %arg1: i32, %arg2: i32) -> (i32, i32, i32) {
    %c0_i32 = arith.constant 0 : i32
    %c0_i32_0 = arith.constant 0 : i32
    %c0_i32_1 = arith.constant 0 : i32
    return %arg2, %c0_i32, %c0_i32_0 : i32, i32, i32
  }
  func.func @transform_4(%arg0: i32, %arg1: i32, %arg2: i32) -> (i32, i32, i32, i32) {
    %c0_i32 = arith.constant 0 : i32
    %c0_i32_0 = arith.constant 0 : i32
    return %arg0, %arg2, %arg1, %c0_i32 : i32, i32, i32, i32
  }
  func.func @transform_5(%arg0: i32, %arg1: i32, %arg2: i32) -> (i32, i32, i32, i32) {
    %c0_i32 = arith.constant 0 : i32
    %c0_i32_0 = arith.constant 0 : i32
    return %arg0, %arg2, %arg1, %c0_i32 : i32, i32, i32, i32
  }
  func.func @transform_6(%arg0: i32, %arg1: i32, %arg2: i32) -> (i32, i32, i32, i32) {
    %c0_i32 = arith.constant 0 : i32
    %c0_i32_0 = arith.constant 0 : i32
    return %arg0, %arg2, %arg1, %c0_i32 : i32, i32, i32, i32
  }
}

</mosaic_0001>

<bundles_post_ra>
// kernel: tpu_custom_call.1
= control target key start
LH: loop header
LB: loop body
LE: loop exit
PB: predicated region body
PF: predicated region fallthrough
CT: control target
= control target key end

     0   :  { %s964_s21 = smov 0   ;;  %s966_s22 = smov 0   ;;  %s1042_s0 = inlined_call_operand.vmem [shape: f32[2,16,32], index: 0, kind: input, shape index: {}]   ;;  %s1043_s1 = inlined_call_operand.vmem [shape: f32[4,32,8], index: 1, kind: input, shape index: {}]   ;;  %s1044_s2 = inlined_call_operand.vmem [shape: f32[4,32,8], index: 2, kind: input, shape index: {}]   ;;  %s1045_s3 = inlined_call_operand.vmem [shape: f32[4,32,8], index: 3, kind: input, shape index: {}]   ;;  %s1046_s4 = inlined_call_operand.vmem [shape: f32[2,4,16,8], index: 4, kind: output, shape index: {0}]   ;;  %s1047_s5 = inlined_call_operand.vmem [shape: f32[2,4,16,8], index: 5, kind: output, shape index: {1}]   ;;  %s1048_s6 = inlined_call_operand.vmem [shape: f32[2,4,16,8], index: 6, kind: output, shape index: {2}]  }
   0x1   :  { %s968_s23 = smov 0   ;;  %s970_s24 = smov 0  }
   0x2   :  { %s972_s25 = smov 0  }
   0x3 LB: > { %s29_s26 = sadd.s32 1, %s919_s23  ;;  %s36_s27 = sadd.s32 1, %s923_s24  ;;  %s927_s25 = sphi %s972_s25, %s17_s25   ;;  %s923_s24 = sphi %s970_s24, %s1052_s24   ;;  %s919_s23 = sphi %s968_s23, %s1051_s23   ;;  %s915_s22 = sphi %s966_s22, %s1050_s22   ;;  %s911_s21 = sphi %s964_s21, %s1049_s21  }
   0x4   : > { %p30_p0 = scmp.ge.s32.totalorder %s29_s26, 4  ;;  %p815_p1 = scmp.ge.s32.totalorder %s927_s25, 1 }
   0x5   : > { %p285_p2 = scmp.lt.s32.totalorder %s927_s25, 9 }
   0x6   : > { %s1054_s26 = smov (%p30_p0, %s29_s26), 0  ;;  %s1056_s27 = smov (!%p30_p0, %s36_s27), %s923_s24 }
   0x7   : > { %p286_p3 = pnand %p815_p1, %p285_p2  ;;  %p38_p4 = scmp.ge.s32.totalorder %s1056_s27, 2 }
   0x8   : > { %p378_p5 = scmp.lt.s32.totalorder (!%p286_p3), %s911_s21, 3  ;;  %p369_p6 = scmp.lt.s32.totalorder (!%p286_p3), %s915_s22, 1 }
   0x9   : > { %s1058_s27 = smov (%p38_p4, %s1056_s27), 0  ;;  %289 = sbr.rel (%p286_p3) target bundleno = 166 (0xa6), region = 36 }
   0xe   : > { %s1060_s21 = smov (!%p378_p5, %s911_s21), 3  ;;  %s1062_s22 = smov (!%p369_p6, %s915_s22), 1  ;;  %vm449_vm0 = vcmask 261120   ;;  %vm481_vm1 = vcmask 64512  }
   0xf   : > { %s842_s28 = sshll.u32 %s1060_s21, 5  ;;  %s824_s29 = sshll.u32 %s1060_s21, 1 }
  0x10   : > { %s392_s8 = scalar_lea.vmem %s1045_s3, %s842_s28  ;;  %s382_s11 = scalar_lea.vmem %s1043_s1, %s842_s28 }
  0x11   : > { %v448_v0 = vld [vmem:[%s392_s8 + $0x18] sm:$0xff]  ;;  %v447_v1 = vld [vmem:[%s392_s8 + $0x10] sm:$0xff]  ;;  %s387_s14 = scalar_lea.vmem %s1044_s2, %s842_s28  ;;  %s841_s15 = sshll.u32 %s1062_s22, 4  ;;  %v446_v4 = vld [vmem:[%s392_s8 + $0x8] sm:$0xff] }
  0x12   : > { %521 = vmatpush.msra.mxu2 %v448_v0  ;;  %v440_v2 = vld [vmem:[%s382_s11 + $0x18] sm:$0xff]  ;;  %s825_s16 = sshll.u32 %s1062_s22, 3  ;;  %s376_s19 = scalar_lea.vmem %s1042_s0, %s841_s15  ;;  %v439_v5 = vld [vmem:[%s382_s11 + $0x10] sm:$0xff]  ;;  %v438_v7 = vld [vmem:[%s382_s11 + $0x8] sm:$0xff] }
  0x13   : > { %v444_v3 = vld [vmem:[%s387_s14 + $0x18] sm:$0xff]  ;;  %845 = vmatpush.msra.mxu3 %v440_v2  ;;  %v443_v6 = vld [vmem:[%s387_s14 + $0x10] sm:$0xff]  ;;  %s403_s20 = sadd.s32 %s825_s16, %s824_s29  ;;  %v442_v8 = vld [vmem:[%s387_s14 + $0x8] sm:$0xff]  ;;  %468 = vmatpush.msra.mxu0 %v440_v2 }
  0x14   : > { %496 = vmatpush.msra.mxu1 %v444_v3  ;;  %522 = vmatpush.msra.mxu2 %v447_v1  ;;  %v445_v9 = vld [vmem:[%s392_s8] sm:$0xff]  ;;  %v436_v13 = vld [vmem:[%s376_s19 + $0x8] sm:$0xff]  ;;  %s826_s21 = sshll.u32 %s403_s20, 3 }
  0x15   : > { %846 = vmatpush.msra.mxu3 %v439_v5  ;;  %v435_v10 = vld [vmem:[%s376_s19] sm:$0xff]  ;;  %469 = vmatpush.msra.mxu0 %v439_v5  ;;  %s419_s29 = scalar_lea.vmem %s1047_s5, %s826_s21  ;;  %s405_s8 = scalar_lea.vmem %s1046_s4, %s826_s21 }
  0x16   : > { %497 = vmatpush.msra.mxu1 %v443_v6  ;;  %523 = vmatpush.msra.mxu2 %v446_v4  ;;  %v437_v11 = vld [vmem:[%s382_s11] sm:$0xff]  ;;  %s433_s11 = scalar_lea.vmem %s1048_s6, %s826_s21 }
  0x17   : > { %847 = vmatpush.msra.mxu3 %v438_v7  ;;  %v441_v12 = vld [vmem:[%s387_s14] sm:$0xff]  ;;  %470 = vmatpush.msra.mxu0 %v438_v7 }
  0x18   : > { %498 = vmatpush.msra.mxu1 %v442_v8  ;;  %524 = vmatpush.msra.mxu2 %v445_v9 }
  0x19   : > { %837 = vmatmul.msk.f32.vlgmr.msra.gmra.mxu2 %vm449_vm0, %v435_v10  ;;  %848 = vmatpush.msra.mxu3 %v437_v11 }
  0x1a   : > { %499 = vmatpush.msra.mxu1 %v441_v12  ;;  %834 = vmatmul.msk.f32.vlgmr.msra.gmra.mxu3 %vm449_vm0, %v436_v13 }
  0x1b   : > { %835 = vmatmul.msk.f32.vlgmr.msra.gmra.mxu1 %vm449_vm0, %v435_v10  ;;  %471 = vmatpush.msra.mxu0 %v437_v11 }
  0x1c   : > { %833 = vmatmul.msk.f32.vlgmr.msra.gmra.mxu0 %vm449_vm0, %v435_v10 }
  0x21   : > { %838 = vmatmul.msk.f32.gmra.mxu2 %vm449_vm0, %v436_v13 }
  0x23   : > { %836 = vmatmul.msk.f32.gmra.mxu1 %vm449_vm0, %v436_v13 }
  0x98   : > { %v501_v14 = vpop.f32.mrf.mxu1 }
  0x99   : > { %507 = vst.msk [vmem:[%s419_s29] sm:$0xff] %vm481_vm1, %v501_v14  ;;  %v473_v15 = vpop.f32.mrf.mxu0 }
  0x9a   : > { %v479_v16 = vmul.f32 0.35355338, %v473_v15 }
  0x9c   : > { %v526_v17 = vpop.f32.mrf.mxu2  ;;  %482 = vst.msk [vmem:[%s405_s8] sm:$0xff] %vm481_vm1, %v479_v16 }
  0x9d   : > { %532 = vst.msk [vmem:[%s433_s11] sm:$0xff] %vm481_vm1, %v526_v17  ;;  %v476_v18 = vpop.f32.mrf.mxu3 }
  0x9e   : > { %v480_v19 = vmul.f32 0.35355338, %v476_v18 }
  0xa0   : > { %483 = vst.msk [vmem:[%s405_s8 + $0x8] sm:$0xff] %vm481_vm1, %v480_v19  ;;  %v504_v20 = vpop.f32.mrf.mxu1 }
  0xa1   : > { %508 = vst.msk [vmem:[%s419_s29 + $0x8] sm:$0xff] %vm481_vm1, %v504_v20 }
  0xa4   : > { %v529_v21 = vpop.f32.mrf.mxu2 }
  0xa5   : > { %533 = vst.msk [vmem:[%s433_s11 + $0x8] sm:$0xff] %vm481_vm1, %v529_v21 }
  0xa6 PF: > { %s17_s25 = sadd.s32 1, %s927_s25   ;;  %s1049_s21 = smov %s919_s23 }
  0xa7   : > { %p14_p7 = scmp.ge.s32.totalorder %s17_s25, 10   ;;  %s1050_s22 = smov %s923_s24 }
  0xa8   : > { %s1051_s23 = smov %s1054_s26  ;;  %s1052_s24 = smov %s1058_s27 }
  0xa9   :  { %16 = sbr.rel (!%p14_p7) target bundleno = 3 (0x3), region = 99 }

</bundles_post_ra>
